<compile_context>
chip_gen: v6e
topology: v6e:2x2x1
jax: 0.10.0
libtpu: 0.0.40
codegen_flags: <defaults>
</compile_context>

<pallas_src>
import math
from functools import partial

import jax
import jax.numpy as jnp
from jax.experimental import pallas as pl
from jax.experimental.pallas import tpu as pltpu  # noqa: F401  (kept for CompilerParams use at larger shapes)


# --------------------------------------------------------------------------
# Kernel bodies
# --------------------------------------------------------------------------
def _fc1_bn_relu(x_ref, w1_ref, b1_ref, compute_dtype):
    """fc1 -> BatchNorm1d (batch stats, affine identity) -> ReLU, f32 stats."""
    x = x_ref[...]
    if x.dtype != compute_dtype:
        x = x.astype(compute_dtype)
    # fc1 on the MXU, f32 accumulation.
    h = jnp.dot(x, w1_ref[...], preferred_element_type=jnp.float32) + b1_ref[...]
    # BatchNorm1d, training mode: batch mean / biased variance, eps=1e-5,
    # gamma=1, beta=0 (fresh-module defaults).  Stats kept in f32.
    mean = jnp.mean(h, axis=0, keepdims=True)
    ctr = h - mean
    var = jnp.mean(ctr * ctr, axis=0, keepdims=True)
    h = ctr * jax.lax.rsqrt(var + 1e-5)
    # ReLU
    h = jnp.maximum(h, 0.0)
    return h.astype(compute_dtype)


def _reparam_and_store(mu, logvar, eps_ref, c_ref, mu_ref, lv_ref):
    eps = eps_ref[...]
    c = mu + eps * jnp.exp(0.5 * logvar)
    c_ref[...] = c.astype(c_ref.dtype)
    mu_ref[...] = mu.astype(mu_ref.dtype)
    lv_ref[...] = logvar.astype(lv_ref.dtype)


def _ca_kernel_split(x_ref, w1_ref, b1_ref,
                     w2mu_ref, b2mu_ref, w2lv_ref, b2lv_ref, eps_ref,
                     c_ref, mu_ref, lv_ref, *, compute_dtype):
    """fc2 split into mu / logvar halves (ca_dim not 128-aligned)."""
    h = _fc1_bn_relu(x_ref, w1_ref, b1_ref, compute_dtype)
    y_mu = jnp.dot(h, w2mu_ref[...], preferred_element_type=jnp.float32) + b2mu_ref[...]
    y_lv = jnp.dot(h, w2lv_ref[...], preferred_element_type=jnp.float32) + b2lv_ref[...]
    mu = jnp.clip(y_mu, -1.0, 1.0)
    # clamp(y, -1, 1) followed by clamp(logvar, -2, 0.5) collapses to [-1, 0.5].
    logvar = jnp.clip(y_lv, -1.0, 0.5)
    _reparam_and_store(mu, logvar, eps_ref, c_ref, mu_ref, lv_ref)


def _ca_kernel_fused(x_ref, w1_ref, b1_ref, w2_ref, b2_ref, eps_ref,
                     c_ref, mu_ref, lv_ref, *, ca_dim, compute_dtype):
    """Single fused fc2 dot; mu/logvar split at a 128-aligned lane offset."""
    h = _fc1_bn_relu(x_ref, w1_ref, b1_ref, compute_dtype)
    y = jnp.dot(h, w2_ref[...], preferred_element_type=jnp.float32) + b2_ref[...]
    mu = jnp.clip(y[:, :ca_dim], -1.0, 1.0)
    logvar = jnp.clip(y[:, ca_dim:], -1.0, 0.5)
    _reparam_and_store(mu, logvar, eps_ref, c_ref, mu_ref, lv_ref)


# --------------------------------------------------------------------------
# Wrapper
# --------------------------------------------------------------------------
def conditioning_augmentation(text_embedding, params, key,
                              compute_dtype=jnp.float32):
    """CA forward pass.

    text_embedding: (B, D) float32
    params: (w1 (D,H), b1 (1,H), w2 (H, 2*ca_dim), b2 (1, 2*ca_dim))
            (weights transposed vs. PyTorch: stored (in, out))
    key: jax.random key (NaN/Inf fallback noise + reparameterization eps)
    compute_dtype: jnp.float32 (reference numerics) or jnp.bfloat16
                   (halves MXU passes / weight DMA at production sizes)
    Returns (c, mu, logvar), each (B, ca_dim) float32.
    """
    w1, b1, w2, b2 = params
    B, D = text_embedding.shape
    H = w1.shape[1]
    ca_dim = w2.shape[1] // 2

    noise_key, eps_key = jax.random.split(key)

    # ---- NaN/Inf guard, gated behind a scalar predicate: the randn_like
    # replacement only executes when the input is actually non-finite
    # (cold path); the common finite path pays a single any-reduce.
    finite = jnp.all(jnp.isfinite(text_embedding))
    x = jax.lax.cond(
        finite,
        lambda t: t,
        lambda t: jax.random.normal(noise_key, t.shape, t.dtype),
        text_embedding,
    )

    # Reparameterization eps ~ N(0,1) (always needed; small (B, ca_dim) draw).
    eps = jax.random.normal(eps_key, (B, ca_dim), jnp.float32)

    # bf16 path: pre-cast weights in the wrapper (halves weight DMA bytes and
    # removes in-kernel cast passes).  Biases stay f32 (added post-accumulate).
    if jnp.dtype(compute_dtype) != jnp.dtype(jnp.float32):
        w1 = w1.astype(compute_dtype)
        w2 = w2.astype(compute_dtype)

    full = lambda shape: pl.BlockSpec(shape, lambda: tuple(0 for _ in shape))
    out_shape = tuple(jax.ShapeDtypeStruct((B, ca_dim), jnp.float32) for _ in range(3))
    out_specs = tuple(full((B, ca_dim)) for _ in range(3))

    if ca_dim % 128 == 0:
        # Lane-aligned split point: one fused dot fills the wide MXU.
        c, mu, logvar = pl.pallas_call(
            partial(_ca_kernel_fused, ca_dim=ca_dim, compute_dtype=compute_dtype),
            out_shape=out_shape,
            grid=(),
            in_specs=[
                full((B, D)),              # x
                full((D, H)),              # w1
                full((1, H)),              # b1
                full((H, 2 * ca_dim)),     # w2 (fused)
                full((1, 2 * ca_dim)),     # b2 (fused)
                full((B, ca_dim)),         # eps
            ],
            out_specs=out_specs,
        )(x, w1, b1, w2, b2, eps)
    else:
        # Pre-split fc2 so the kernel never lane-slices at a non-128 offset.
        # (Static param plumbing; hoisted/folded under jit with constant params.)
        w2_mu, w2_lv = w2[:, :ca_dim], w2[:, ca_dim:]
        b2_mu, b2_lv = b2[:, :ca_dim], b2[:, ca_dim:]
        c, mu, logvar = pl.pallas_call(
            partial(_ca_kernel_split, compute_dtype=compute_dtype),
            out_shape=out_shape,
            grid=(),
            in_specs=[
                full((B, D)),              # x
                full((D, H)),              # w1
                full((1, H)),              # b1
                full((H, ca_dim)),         # w2_mu
                full((1, ca_dim)),         # b2_mu
                full((H, ca_dim)),         # w2_lv
                full((1, ca_dim)),         # b2_lv
                full((B, ca_dim)),         # eps
            ],
            out_specs=out_specs,
        )(x, w1, b1, w2_mu, b2_mu, w2_lv, b2_lv, eps)

    return c, mu, logvar


# --------------------------------------------------------------------------
# Parameter init (matches the PyTorch __init__: xavier_uniform gains 0.5/0.3,
# zero biases).  Weights stored (in, out).
# --------------------------------------------------------------------------
def init_params(key, input_dim, ca_dim):
    hidden = input_dim // 2
    out_dim = ca_dim * 2
    k1, k2 = jax.random.split(key)

    def xavier_uniform(k, fan_in, fan_out, gain):
        bound = gain * math.sqrt(6.0 / (fan_in + fan_out))
        return jax.random.uniform(k, (fan_in, fan_out), jnp.float32,
                                  minval=-bound, maxval=bound)

    w1 = xavier_uniform(k1, input_dim, hidden, gain=0.5)
    b1 = jnp.zeros((1, hidden), jnp.float32)
    w2 = xavier_uniform(k2, hidden, out_dim, gain=0.3)
    b2 = jnp.zeros((1, out_dim), jnp.float32)
    return (w1, b1, w2, b2)


# --------------------------------------------------------------------------
# Pure-JAX reference (mu / logvar are deterministic given x and params).
# --------------------------------------------------------------------------
def _reference_mu_logvar(x, params, ca_dim):
    w1, b1, w2, b2 = params
    hp = jax.lax.Precision.HIGHEST
    h = jnp.dot(x, w1, precision=hp) + b1
    mean = jnp.mean(h, axis=0, keepdims=True)
    ctr = h - mean
    var = jnp.mean(ctr * ctr, axis=0, keepdims=True)
    h = jnp.maximum(ctr * jax.lax.rsqrt(var + 1e-5), 0.0)
    y = jnp.clip(jnp.dot(h, w2, precision=hp) + b2, -1.0, 1.0)
    mu = y[:, :ca_dim]
    logvar = jnp.clip(y[:, ca_dim:], -2.0, 0.5)
    return mu, logvar


if __name__ == "__main__":
    # Small shapes consistent with the module's parametrization.
    B = 8
    INPUT_DIM = 64     # -> hidden = 32
    CA_DIM = 16        # -> fc2 out = 32 (mu 16 + logvar 16)

    root = jax.random.PRNGKey(0)
    k_x, k_params, k_call, k_call2 = jax.random.split(root, 4)

    text_embedding = jax.random.normal(k_x, (B, INPUT_DIM), jnp.float32)
    params = init_params(k_params, INPUT_DIM, CA_DIM)

    c, mu, logvar = conditioning_augmentation(text_embedding, params, k_call)
    jax.block_until_ready((c, mu, logvar))

    assert c.shape == (B, CA_DIM) and mu.shape == (B, CA_DIM) and logvar.shape == (B, CA_DIM)
    assert bool(jnp.all(jnp.isfinite(c)))
    assert bool(jnp.all(mu >= -1.0)) and bool(jnp.all(mu <= 1.0))
    assert bool(jnp.all(logvar >= -2.0)) and bool(jnp.all(logvar <= 0.5))

    # Numerics check against a pure-JAX reference (deterministic given x, params).
    mu_ref, lv_ref = _reference_mu_logvar(text_embedding, params, CA_DIM)
    assert bool(jnp.allclose(mu, mu_ref, atol=2e-3, rtol=2e-3))
    assert bool(jnp.allclose(logvar, lv_ref, atol=2e-3, rtol=2e-3))

    # Exercise the gated NaN/Inf fallback path (whole tensor replaced with
    # noise): outputs must still be finite and in range.
    bad_embedding = text_embedding.at[0, 0].set(jnp.nan)
    c2, mu2, logvar2 = conditioning_augmentation(bad_embedding, params, k_call2)
    jax.block_until_ready((c2, mu2, logvar2))
    assert bool(jnp.all(jnp.isfinite(c2)))
    assert bool(jnp.all(mu2 >= -1.0)) and bool(jnp.all(mu2 <= 1.0))
    assert bool(jnp.all(logvar2 >= -2.0)) and bool(jnp.all(logvar2 <= 0.5))

    print("KERNEL_OK")
</pallas_src>

<mosaic_0001>
module attributes {stable_mosaic.version = 11 : i64} {
  func.func @_ca_kernel_split(%arg0: memref<8x64xf32, #tpu.memory_space<vmem>>, %arg1: memref<64x32xf32, #tpu.memory_space<vmem>>, %arg2: memref<1x32xf32, #tpu.memory_space<vmem>>, %arg3: memref<32x16xf32, #tpu.memory_space<vmem>>, %arg4: memref<1x16xf32, #tpu.memory_space<vmem>>, %arg5: memref<32x16xf32, #tpu.memory_space<vmem>>, %arg6: memref<1x16xf32, #tpu.memory_space<vmem>>, %arg7: memref<8x16xf32, #tpu.memory_space<vmem>>, %arg8: memref<8x16xf32, #tpu.memory_space<vmem>>, %arg9: memref<8x16xf32, #tpu.memory_space<vmem>>, %arg10: memref<8x16xf32, #tpu.memory_space<vmem>>) attributes {dimension_semantics = [], scalar_prefetch = 0 : i64, scratch_operands = 0 : i64, tpu.core_type = #tpu.core_type<tc>} {
    %c0 = arith.constant 0 : index
    %c0_0 = arith.constant 0 : index
    %0 = vector.load %arg0[%c0, %c0_0] : memref<8x64xf32, #tpu.memory_space<vmem>>, vector<8x64xf32>
    %c0_1 = arith.constant 0 : index
    %c0_2 = arith.constant 0 : index
    %1 = vector.load %arg1[%c0_1, %c0_2] : memref<64x32xf32, #tpu.memory_space<vmem>>, vector<64x32xf32>
    %cst = arith.constant dense<0.000000e+00> : vector<8x32xf32>
    %2 = tpu.matmul %0, %1, %cst {dimension_numbers = #tpu.dot_dimension_numbers<[1], [0], [0], [1], [0, 0, 1, 1], [], []>} : vector<8x64xf32>, vector<64x32xf32>, vector<8x32xf32> -> vector<8x32xf32>
    %c0_3 = arith.constant 0 : index
    %c0_4 = arith.constant 0 : index
    %3 = vector.load %arg2[%c0_3, %c0_4] : memref<1x32xf32, #tpu.memory_space<vmem>>, vector<1x32xf32>
    %4 = vector.broadcast %3 : vector<1x32xf32> to vector<8x32xf32>
    %5 = arith.addf %2, %4 : vector<8x32xf32>
    %cst_5 = arith.constant dense<0.000000e+00> : vector<32xf32>
    %6 = vector.multi_reduction <add>, %5, %cst_5 [0] : vector<8x32xf32> to vector<32xf32>
    %7 = vector.shape_cast %6 : vector<32xf32> to vector<1x32xf32>
    %cst_6 = arith.constant 8.000000e+00 : f32
    %8 = vector.broadcast %cst_6 : f32 to vector<1x32xf32>
    %9 = arith.divf %7, %8 : vector<1x32xf32>
    %10 = vector.broadcast %9 : vector<1x32xf32> to vector<8x32xf32>
    %11 = arith.subf %5, %10 : vector<8x32xf32>
    %12 = arith.mulf %11, %11 : vector<8x32xf32>
    %cst_7 = arith.constant dense<0.000000e+00> : vector<32xf32>
    %13 = vector.multi_reduction <add>, %12, %cst_7 [0] : vector<8x32xf32> to vector<32xf32>
    %14 = vector.shape_cast %13 : vector<32xf32> to vector<1x32xf32>
    %cst_8 = arith.constant 8.000000e+00 : f32
    %15 = vector.broadcast %cst_8 : f32 to vector<1x32xf32>
    %16 = arith.divf %14, %15 : vector<1x32xf32>
    %cst_9 = arith.constant 9.99999974E-6 : f32
    %17 = vector.broadcast %cst_9 : f32 to vector<1x32xf32>
    %18 = arith.addf %16, %17 : vector<1x32xf32>
    %19 = math.rsqrt %18 : vector<1x32xf32>
    %20 = vector.broadcast %19 : vector<1x32xf32> to vector<8x32xf32>
    %21 = arith.mulf %11, %20 : vector<8x32xf32>
    %cst_10 = arith.constant 0.000000e+00 : f32
    %22 = vector.broadcast %cst_10 : f32 to vector<8x32xf32>
    %23 = arith.maximumf %21, %22 : vector<8x32xf32>
    %c0_11 = arith.constant 0 : index
    %c0_12 = arith.constant 0 : index
    %24 = vector.load %arg3[%c0_11, %c0_12] : memref<32x16xf32, #tpu.memory_space<vmem>>, vector<32x16xf32>
    %cst_13 = arith.constant dense<0.000000e+00> : vector<8x16xf32>
    %25 = tpu.matmul %23, %24, %cst_13 {dimension_numbers = #tpu.dot_dimension_numbers<[1], [0], [0], [1], [0, 0, 1, 1], [], []>} : vector<8x32xf32>, vector<32x16xf32>, vector<8x16xf32> -> vector<8x16xf32>
    %c0_14 = arith.constant 0 : index
    %c0_15 = arith.constant 0 : index
    %26 = vector.load %arg4[%c0_14, %c0_15] : memref<1x16xf32, #tpu.memory_space<vmem>>, vector<1x16xf32>
    %27 = vector.broadcast %26 : vector<1x16xf32> to vector<8x16xf32>
    %28 = arith.addf %25, %27 : vector<8x16xf32>
    %c0_16 = arith.constant 0 : index
    %c0_17 = arith.constant 0 : index
    %29 = vector.load %arg5[%c0_16, %c0_17] : memref<32x16xf32, #tpu.memory_space<vmem>>, vector<32x16xf32>
    %cst_18 = arith.constant dense<0.000000e+00> : vector<8x16xf32>
    %30 = tpu.matmul %23, %29, %cst_18 {dimension_numbers = #tpu.dot_dimension_numbers<[1], [0], [0], [1], [0, 0, 1, 1], [], []>} : vector<8x32xf32>, vector<32x16xf32>, vector<8x16xf32> -> vector<8x16xf32>
    %c0_19 = arith.constant 0 : index
    %c0_20 = arith.constant 0 : index
    %31 = vector.load %arg6[%c0_19, %c0_20] : memref<1x16xf32, #tpu.memory_space<vmem>>, vector<1x16xf32>
    %32 = vector.broadcast %31 : vector<1x16xf32> to vector<8x16xf32>
    %33 = arith.addf %30, %32 : vector<8x16xf32>
    %cst_21 = arith.constant -1.000000e+00 : f32
    %cst_22 = arith.constant 1.000000e+00 : f32
    %34 = vector.broadcast %cst_21 : f32 to vector<8x16xf32>
    %35 = arith.maximumf %34, %28 : vector<8x16xf32>
    %36 = vector.broadcast %cst_22 : f32 to vector<8x16xf32>
    %37 = arith.minimumf %36, %35 : vector<8x16xf32>
    %cst_23 = arith.constant -1.000000e+00 : f32
    %cst_24 = arith.constant 5.000000e-01 : f32
    %38 = vector.broadcast %cst_23 : f32 to vector<8x16xf32>
    %39 = arith.maximumf %38, %33 : vector<8x16xf32>
    %40 = vector.broadcast %cst_24 : f32 to vector<8x16xf32>
    %41 = arith.minimumf %40, %39 : vector<8x16xf32>
    %c0_25 = arith.constant 0 : index
    %c0_26 = arith.constant 0 : index
    %42 = vector.load %arg7[%c0_25, %c0_26] : memref<8x16xf32, #tpu.memory_space<vmem>>, vector<8x16xf32>
    %cst_27 = arith.constant 5.000000e-01 : f32
    %43 = vector.broadcast %cst_27 : f32 to vector<8x16xf32>
    %44 = arith.mulf %43, %41 : vector<8x16xf32>
    %45 = math.exp %44 : vector<8x16xf32>
    %46 = arith.mulf %42, %45 : vector<8x16xf32>
    %47 = arith.addf %37, %46 : vector<8x16xf32>
    %c0_28 = arith.constant 0 : index
    %c0_29 = arith.constant 0 : index
    %48 = vector.load %arg8[%c0_28, %c0_29] : memref<8x16xf32, #tpu.memory_space<vmem>>, vector<8x16xf32>
    tpu.vector_store %arg8[%c0_28, %c0_29], %47 {strides = array<i32>} : memref<8x16xf32, #tpu.memory_space<vmem>>, vector<8x16xf32>,
    %c0_30 = arith.constant 0 : index
    %c0_31 = arith.constant 0 : index
    %49 = vector.load %arg9[%c0_30, %c0_31] : memref<8x16xf32, #tpu.memory_space<vmem>>, vector<8x16xf32>
    tpu.vector_store %arg9[%c0_30, %c0_31], %37 {strides = array<i32>} : memref<8x16xf32, #tpu.memory_space<vmem>>, vector<8x16xf32>,
    %c0_32 = arith.constant 0 : index
    %c0_33 = arith.constant 0 : index
    %50 = vector.load %arg10[%c0_32, %c0_33] : memref<8x16xf32, #tpu.memory_space<vmem>>, vector<8x16xf32>
    tpu.vector_store %arg10[%c0_32, %c0_33], %41 {strides = array<i32>} : memref<8x16xf32, #tpu.memory_space<vmem>>, vector<8x16xf32>,
    return
  }
}

</mosaic_0001>

<bundles_post_ra>
// kernel: tpu_custom_call.1
= control target key start
LH: loop header
LB: loop body
LE: loop exit
PB: predicated region body
PF: predicated region fallthrough
CT: control target
= control target key end

     0   :  { %16 = vsyncpa [#allocation3], 0  ;;  %v508_v1 = vmov 0.0   ;;  %vm509_vm0 = vmmov 0   ;;  %s669_s0 = inlined_call_operand.vmem [shape: f32[8,64], index: 0, kind: input, shape index: {}]   ;;  %s670_s1 = inlined_call_operand.vmem [shape: f32[64,32], index: 1, kind: input, shape index: {}]   ;;  %s671_s2 = inlined_call_operand.vmem [shape: f32[1,32], index: 2, kind: input, shape index: {}]   ;;  %s672_s3 = inlined_call_operand.vmem [shape: f32[32,16], index: 3, kind: input, shape index: {}]   ;;  %s673_s4 = inlined_call_operand.vmem [shape: f32[1,16], index: 4, kind: input, shape index: {}]   ;;  %s674_s5 = inlined_call_operand.vmem [shape: f32[32,16], index: 5, kind: input, shape index: {}]   ;;  %s675_s6 = inlined_call_operand.vmem [shape: f32[1,16], index: 6, kind: input, shape index: {}]   ;;  %s676_s7 = inlined_call_operand.vmem [shape: f32[8,16], index: 7, kind: input, shape index: {}]   ;;  %s677_s8 = inlined_call_operand.hbm [shape: f32[8,16], index: 8, kind: output, shape index: {0}]   ;;  %s678_s9 = inlined_call_operand.hbm [shape: f32[8,16], index: 9, kind: output, shape index: {1}]   ;;  %s679_s10 = inlined_call_operand.hbm [shape: f32[8,16], index: 10, kind: output, shape index: {2}]  }
   0x1   :  { %v42_v0 = vld [vmem:[%s670_s1 + $0x38] sm:$0xff]  ;;  %394 = vmatprep.subr.mxu0 %v508_v1  ;;  %v41_v2 = vld [vmem:[%s670_s1 + $0x30] sm:$0xff]  ;;  %410 = vmatprep.mubr.msk.f32.mxu0 %vm509_vm0, %v508_v1  ;;  %v40_v3 = vld [vmem:[%s670_s1 + $0x28] sm:$0xff] }
   0x2   :  { %395 = vmatpush3.msra.mxu0 %v42_v0  ;;  %413 = vmatprep.subr.mxu1 %v508_v1 }
   0x3   :  { %396 = vmatprep.subr.mxu0 %v508_v1  ;;  %421 = vmatprep.mubr.msk.f32.mxu1 %vm509_vm0, %v508_v1 }
   0x4   :  { %17 = vsyncpa [#allocation5], 0  ;;  %397 = vmatpush3.msra.mxu0 %v41_v2  ;;  %v39_v4 = vld [vmem:[%s670_s1 + $0x20] sm:$0xff]  ;;  %v38_v5 = vld [vmem:[%s670_s1 + $0x18] sm:$0xff]  ;;  %vm50_vm1 = vcmask 523264   ;;  %vm124_vm2 = vcmask 261120  }
   0x5   :  { %398 = vmatprep.subr.mxu0 %v508_v1  ;;  %v37_v6 = vld [vmem:[%s670_s1 + $0x10] sm:$0xff]  ;;  %v36_v7 = vld [vmem:[%s670_s1 + $0x8] sm:$0xff]  ;;  %v35_v8 = vld [vmem:[%s670_s1] sm:$0xff]  ;;  %s510_s27 = smov [#allocation4]   ;;  %vm323_vm3 = vcmask 130048  }
   0x6   :  { %399 = vmatpush3.msra.mxu0 %v40_v3  ;;  %v34_v9 = vld [vmem:[%s669_s0] sm:$0xff]  ;;  %v151_v10 = vld [vmem:[%s672_s3 + $0x18] sm:$0xff]  ;;  %v150_v11 = vld [vmem:[%s672_s3 + $0x10] sm:$0xff]  ;;  %s343_s28 = sshll.u32 %s510_s27, 4  ;;  %s344_s28 = int_to_ptr.vmem [resolvable:$true] %s343_s28 }
   0x7   :  { %400 = vmatprep.subr.mxu0 %v508_v1  ;;  %414 = vmatpush3.msra.mxu1 %v151_v10  ;;  %v149_v12 = vld [vmem:[%s672_s3 + $0x8] sm:$0xff]  ;;  %v148_v13 = vld [vmem:[%s672_s3] sm:$0xff]  ;;  %v235_v40 = vld [vmem:[%s674_s5 + $0x18] sm:$0xff]  ;;  %s444_s30 = scalar_lea.vmem %s344_s28, 128  ;;  %p449_p1 = scmp.lt.s32.totalorder %s344_s28, %s344_s28 }
   0x8   :  { %401 = vmatpush3.msra.mxu0 %v39_v4  ;;  %415 = vmatprep.subr.mxu1 %v508_v1  ;;  %v368_v14 = vld [vmem:[%s671_s2] ss:$0 sm:$0xff]  ;;  %v234_v41 = vld [vmem:[%s674_s5 + $0x10] sm:$0xff]  ;;  %v233_v42 = vld [vmem:[%s674_s5 + $0x8] sm:$0xff]  ;;  %p445_p0 = scmp.ne.s32.totalorder %s344_s28, %s444_s30  ;;  %p450_p2 = scmp.lt.s32.totalorder %s444_s30, %s444_s30 }
   0x9   :  { %402 = vmatprep.subr.mxu0 %v508_v1  ;;  %416 = vmatpush3.msra.mxu1 %v150_v11  ;;  %v232_v43 = vld [vmem:[%s674_s5] sm:$0xff] }
   0xa   :  { %403 = vmatpush3.msra.mxu0 %v38_v5  ;;  %417 = vmatprep.subr.mxu1 %v508_v1  ;;  %v370_v44 = vld [vmem:[%s673_s4] ss:$0 sm:$0xff]  ;;  %p451_p3 = por %p450_p2, %p449_p1 }
   0xb   :  { %404 = vmatprep.subr.mxu0 %v508_v1  ;;  %418 = vmatpush3.msra.mxu1 %v149_v12  ;;  %v372_v49 = vld [vmem:[%s675_s6] ss:$0 sm:$0xff] }
   0xc   :  { %405 = vmatpush3.msra.mxu0 %v37_v6  ;;  %419 = vmatprep.subr.mxu1 %v508_v1  ;;  %p452_p4 = pnand %p451_p3, %p445_p0 }
   0xd   :  { %406 = vmatprep.subr.mxu0 %v508_v1  ;;  %420 = vmatpush3.msra.mxu1 %v148_v13 }
   0xe   :  { %407 = vmatpush3.msra.mxu0 %v36_v7  ;;  %424 = vmatprep.subr.mxu1 %v508_v1 }
   0xf   :  { %408 = vmatprep.subr.mxu0 %v508_v1 }
  0x10   :  { %409 = vmatpush3.msra.mxu0 %v35_v8 }
  0x11   :  { %411 = vmatmul.mubr.msk.f32.vlgmr.msra.gmra.mxu0 %vm50_vm1, %v34_v9 }
  0xd1   :  { %v120_v15 = vpop.f32.mrf.mxu0 }
  0xd2   :  { %v121_v16 = vadd.f32 %v368_v14, %v120_v15 }
  0xd3   :  { %v412_v17 = vpop.f32.mrf.mxu0 }
  0xd4   :  { %v125_v18 = vsel %vm124_vm2, %v121_v16, 0.0 }
  0xd5   :  { %v126_v19 = vrot.slane %v125_v18, 4 }
  0xd7   :  { %v127_v20 = vadd.f32 %v126_v19, %v125_v18 }
  0xd9   :  { %v128_v21 = vrot.slane %v127_v20, 2 }
  0xdb   :  { %v129_v22 = vadd.f32 %v128_v21, %v127_v20 }
  0xdd   :  { %v130_v23 = vrot.slane %v129_v22, 1 }
  0xdf   :  { %v131_v24 = vadd.f32 %v130_v23, %v129_v22 }
  0xe1   :  { %v133_v25 = vmul.f32 0.125, %v131_v24 }
  0xe3   :  { %v134_v26 = vsub.f32 %v121_v16, %v133_v25 }
  0xe5   :  { %v135_v27 = vmul.f32 %v134_v26, %v134_v26 }
  0xe7   :  { %v136_v28 = vsel %vm124_vm2, %v135_v27, 0.0 }
  0xe8   :  { %v137_v29 = vrot.slane %v136_v28, 4 }
  0xea   :  { %v138_v30 = vadd.f32 %v137_v29, %v136_v28 }
  0xec   :  { %v139_v31 = vrot.slane %v138_v30, 2 }
  0xee   :  { %v140_v32 = vadd.f32 %v139_v31, %v138_v30 }
  0xf0   :  { %v141_v33 = vrot.slane %v140_v32, 1 }
  0xf2   :  { %v142_v34 = vadd.f32 %v141_v33, %v140_v32 }
  0xf4   :  { %v143_v35 = vmul.f32 0.125, %v142_v34 }
  0xf6   :  { %v144_v36 = vadd.f32 1e-05, %v143_v35 }
  0xf8   :  { %440 = vrsqrt.f32 %v144_v36 }
 0x105   :  { %v441_v37 = vpop.eup %440 }
 0x106   :  { %v146_v38 = vmul.f32 %v441_v37, %v134_v26 }
 0x108   :  { %v147_v39 = vmax.f32 %v146_v38, 0.0 }
 0x10a   :  { %422 = vmatmul.mubr.msk.f32.vlgmr.msra.gmra.mxu1 %vm124_vm2, %v147_v39 }
 0x10b   :  { %425 = vmatpush3.msra.mxu1 %v235_v40  ;;  %432 = vmatprep.mubr.msk.f32.mxu1 %vm509_vm0, %v508_v1 }
 0x10c   :  { %426 = vmatprep.subr.mxu1 %v508_v1 }
 0x10d   :  { %427 = vmatpush3.msra.mxu1 %v234_v41 }
 0x10e   :  { %428 = vmatprep.subr.mxu1 %v508_v1 }
 0x10f   :  { %429 = vmatpush3.msra.mxu1 %v233_v42 }
 0x110   :  { %430 = vmatprep.subr.mxu1 %v508_v1 }
 0x111   :  { %431 = vmatpush3.msra.mxu1 %v232_v43 }
 0x112   :  { %433 = vmatmul.mubr.msk.f32.vlgmr.msra.gmra.mxu1 %vm124_vm2, %v147_v39 }
 0x1ca   :  { %v228_v45 = vpop.f32.mrf.mxu1 }
 0x1cb   :  { %v229_v46 = vadd.f32 %v370_v44, %v228_v45 }
 0x1cc   :  { %v423_v47 = vpop.f32.mrf.mxu1 }
 0x1cd   :  { %v374_v48 = vclamps-f32 %v229_v46, 1.0 }
 0x1cf   :  { %325 = vst.msk [vmem:[#allocation4] sm:$0xff] %vm323_vm3, %v374_v48 }
 0x1d0   :  { %455 = shalt.err (!%p452_p4)
}
 0x1d1   :  { %346 = dma.vmem_to_hbm [thread:$0]  %s344_s28, 128, %s678_s9, [#allocation5]  }
 0x1d2   :  { %v309_v50 = vpop.f32.mrf.mxu1  ;;  %s511_s12 = smov [#allocation6]  }
 0x1d3   :  { %v310_v51 = vadd.f32 %v372_v49, %v309_v50  ;;  %s353_s13 = sshll.u32 %s511_s12, 4  ;;  %s354_s13 = int_to_ptr.vmem [resolvable:$true] %s353_s13 }
 0x1d4   :  { %v434_v52 = vpop.f32.mrf.mxu1  ;;  %s464_s6 = scalar_lea.vmem %s354_s13, 128  ;;  %p469_p6 = scmp.lt.s32.totalorder %s354_s13, %s354_s13 }
 0x1d5   :  { %v315_v53 = vmax.f32 %v310_v51, -1.0  ;;  %p465_p5 = scmp.ne.s32.totalorder %s354_s13, %s464_s6  ;;  %p470_p7 = scmp.lt.s32.totalorder %s464_s6, %s464_s6 }
 0x1d7   :  { %v316_v54 = vmin.f32 %v315_v53, 0.5  ;;  %p471_p8 = por %p470_p7, %p469_p6 }
 0x1d9   :  { %v318_v55 = vmul.f32 0.5, %v316_v54  ;;  %326 = vst.msk [vmem:[#allocation6] sm:$0xff] %vm323_vm3, %v316_v54  ;;  %p472_p9 = pnand %p471_p8, %p465_p5 }
 0x1db   :  { %475 = shalt.err (!%p472_p9)
}
 0x1dc   :  { %356 = dma.vmem_to_hbm [thread:$0]  %s354_s13, 128, %s679_s10, [#allocation5]   ;;  %v319_v56 = vmul.f32 1.442695, %v318_v55  ;;  %v317_v57 = vld [vmem:[%s676_s7] sm:$0xff] }
 0x1dd   :  { %s512_s15 = smov [#allocation2]  }
 0x1de   :  { %442 = vpow2.f32 %v319_v56  ;;  %s333_s16 = sshll.u32 %s512_s15, 4  ;;  %s334_s16 = int_to_ptr.vmem [resolvable:$true] %s333_s16 }
 0x1df   :  { %s484_s17 = scalar_lea.vmem %s334_s16, 128  ;;  %p489_p11 = scmp.lt.s32.totalorder %s334_s16, %s334_s16 }
 0x1e0   :  { %p485_p10 = scmp.ne.s32.totalorder %s334_s16, %s484_s17  ;;  %p490_p12 = scmp.lt.s32.totalorder %s484_s17, %s484_s17 }
 0x1e2   :  { %p491_p13 = por %p490_p12, %p489_p11 }
 0x1e4   :  { %p492_p0 = pnand %p491_p13, %p485_p10 }
 0x1eb   :  { %v443_v58 = vpop.eup %442 }
 0x1ec   :  { %v321_v59 = vmul.f32 %v443_v58, %v317_v57 }
 0x1ee   :  { %v322_v60 = vadd.f32 %v374_v48, %v321_v59 }
 0x1f0   :  { %324 = vst.msk [vmem:[#allocation2] sm:$0xff] %vm323_vm3, %v322_v60 }
 0x1f1   :  { %495 = shalt.err (!%p492_p0)
}
 0x1f2   :  { %336 = dma.vmem_to_hbm [thread:$0]  %s334_s16, 128, %s677_s8, [#allocation3]  }
 0x1f3   :  { %504 = dma.done.wait [#allocation3], 128  }
 0x1f4   :  { %505 = vsyncadd [#allocation3], 4294967168 }
 0x1f5   :  { %506 = dma.done.wait [#allocation5], 256  }
 0x1f6   :  { %507 = vsyncadd [#allocation5], 4294967040 }
 0x1f7   :  { %366 = vsyncpa [#allocation3], 1 }
 0x1f8   :  { %367 = vsyncpa [#allocation5], 1 }

</bundles_post_ra>
